<compile_context>
chip_gen: v5e
topology: v5e:2x2
jax: 0.10.0
libtpu: 0.0.40
codegen_flags: <defaults>
</compile_context>

<pallas_src>
import jax
import jax.numpy as jnp
from jax import lax
from jax.experimental import pallas as pl
from jax.experimental.pallas import tpu as pltpu

_IN = 16          # fc1 in_features
_H1 = 8           # fc1 out / fc2 in
_H2 = 4           # fc2 out / fc3 in
_LANE = 128
_DEFAULT_TILE_N = 16384            # batch rows per grid step (multiple of 128)
_PARAM_ROWS = _H1 + _H2 + 1        # 13
_PARAM_COLS = _IN + 1              # 17: cols 0:16 weights, col 16 bias


def _round_up(x, m):
    return (x + m - 1) // m * m


def _mlp_kernel(x_ref, p_ref, o_ref):
    """x_ref: (tn, 16) native batch-major tile.  p_ref: (13, 17) packed params.
    o_ref: (1, tn) lane-dense output tile."""
    x = x_ref[...]                                   # (tn, 16) f32

    w1 = p_ref[0:8, 0:16]                            # (8, 16)
    b1 = p_ref[0:8, 16:17]                           # (8, 1)
    w2 = p_ref[8:12, 0:8]                            # (4, 8)
    b2 = p_ref[8:12, 16:17]                          # (4, 1)
    w3 = p_ref[12:13, 0:4]                           # (1, 4)
    b3 = p_ref[12:13, 16:17]                         # (1, 1)

    # Contract the feature axis of both operands (== w1 @ x.T) so the relayout
    # happens in VMEM/MXU and every intermediate is feature-major, lane-dense.
    h1 = lax.dot_general(w1, x, (((1,), (1,)), ((), ())),
                         preferred_element_type=jnp.float32)        # (8, tn)
    h1 = jnp.maximum(h1 + b1, 0.0)                                  # ReLU
    h2 = jnp.dot(w2, h1, preferred_element_type=jnp.float32)        # (4, tn)
    h2 = jnp.maximum(h2 + b2, 0.0)                                  # ReLU
    o_ref[...] = jnp.dot(w3, h2, preferred_element_type=jnp.float32) + b3


def pack_params(params):
    """Pack the six torch-layout tensors into one (13, 17) f32 slab.
       rows 0:8  -> fc1 (w1 in cols 0:16, b1 in col 16)
       rows 8:12 -> fc2 (w2 in cols 0:8,  b2 in col 16)
       row  12   -> fc3 (w3 in cols 0:4,  b3 in col 16)"""
    slab = jnp.zeros((_PARAM_ROWS, _PARAM_COLS), jnp.float32)
    slab = slab.at[0:8, 0:16].set(jnp.asarray(params["w1"], jnp.float32))
    slab = slab.at[0:8, 16].set(jnp.asarray(params["b1"], jnp.float32).reshape(_H1))
    slab = slab.at[8:12, 0:8].set(jnp.asarray(params["w2"], jnp.float32))
    slab = slab.at[8:12, 16].set(jnp.asarray(params["b2"], jnp.float32).reshape(_H2))
    slab = slab.at[12, 0:4].set(jnp.asarray(params["w3"], jnp.float32).reshape(_H2))
    slab = slab.at[12, 16].set(jnp.asarray(params["b3"], jnp.float32).reshape(()))
    return slab


def value_net_forward(x, params, *, tile_n=_DEFAULT_TILE_N,
                      force_pallas=False, min_pallas_rows=1024):
    """Pallas implementation of valueNet.forward.

    x      : (B, *feat) or (feat,); flattened to (B, 16) like x.view(-1, nf).
    params : dict with torch-layout weights:
             w1 (8,16) b1 (8,1)  w2 (4,8) b2 (4,1)  w3 (1,4) b3 (1,1)
    Returns (B, 1) float32, matching the torch fc3 output.
    """
    x = jnp.asarray(x, dtype=jnp.float32)            # torch.from_numpy + .float()
    if x.ndim == 1:
        x = x[None, :]                               # unsqueeze(0)
    x = x.reshape(x.shape[0], -1)                    # view(-1, num_flat_features)
    assert x.shape[1] == _IN, "valueNet expects 16 flattened features"
    B = x.shape[0]

    # Small-batch fast path: fixed pallas_call + DMA overhead dwarfs ~264 flops/row.
    if B < min_pallas_rows and not force_pallas:
        return _reference(x, params)

    slab = pack_params(params)

    # Tiny batches: pad rows to one 128-lane tile (a few KiB).  Large ragged
    # batches are NOT padded: the last grid step uses a clipped edge block.
    n_rows, x_in = B, x
    if n_rows < _LANE:
        x_in = jnp.pad(x, ((0, _LANE - n_rows), (0, 0)))
        n_rows = _LANE

    # Lane tile: multiple of 128, no larger than the (128-rounded) batch, and
    # capped to ~half the batch so the grid has >= 2 steps (v7x has 2 TCs).
    tn = max(_LANE, min(_round_up(tile_n, _LANE), _round_up(n_rows, _LANE)))
    if n_rows >= 2 * _LANE:
        tn = min(tn, _round_up((n_rows + 1) // 2, _LANE))
    grid = (pl.cdiv(n_rows, tn),)

    # (tn, 16) f32 blocks lane-pad to (tn, 128) in VMEM -> tn*512 B per buffer,
    # double-buffered.  Raise the scoped-VMEM limit accordingly (v5e default is
    # only ~16 MiB); stays far below v7x's 64 MiB physical VMEM at tn = 16K.
    vmem_limit = int(min(max(32 << 20, 2 * tn * 512 + (8 << 20)), 128 << 20))

    out = pl.pallas_call(
        _mlp_kernel,
        out_shape=jax.ShapeDtypeStruct((1, n_rows), jnp.float32),
        grid=grid,
        in_specs=[
            # Streamed input, native layout (no wrapper transpose / no pad copy).
            pl.BlockSpec((tn, _IN), lambda i: (i, 0)),
            # Packed parameters: constant index_map -> VMEM-resident across steps.
            pl.BlockSpec((_PARAM_ROWS, _PARAM_COLS), lambda i: (0, 0)),
        ],
        out_specs=pl.BlockSpec((1, tn), lambda i: (0, i)),   # lane-dense output
        compiler_params=pltpu.CompilerParams(
            dimension_semantics=("parallel",),               # shard batch tiles
            vmem_limit_bytes=vmem_limit),
    )(x_in, slab)

    return out[0, :B].reshape(B, 1)


def init_params(key):
    """Deterministic init mimicking nn.Linear default U[-1/sqrt(fan_in), +].
    Weights stored in torch layout (out_features, in_features); biases (out, 1)."""
    def linear(k, fan_in, fan_out):
        kw, kb = jax.random.split(k)
        bound = 1.0 / jnp.sqrt(float(fan_in))
        w = jax.random.uniform(kw, (fan_out, fan_in), jnp.float32, -bound, bound)
        b = jax.random.uniform(kb, (fan_out, 1), jnp.float32, -bound, bound)
        return w, b

    k1, k2, k3 = jax.random.split(key, 3)
    w1, b1 = linear(k1, _IN, _H1)
    w2, b2 = linear(k2, _H1, _H2)
    w3, b3 = linear(k3, _H2, 1)
    return dict(w1=w1, b1=b1, w2=w2, b2=b2, w3=w3, b3=b3)


def _reference(x, p):
    """Pure-JAX reference of the same forward (also the small-batch fast path)."""
    x = jnp.asarray(x, jnp.float32)
    if x.ndim == 1:
        x = x[None, :]
    x = x.reshape(x.shape[0], -1)
    h1 = jnp.maximum(x @ p["w1"].T + p["b1"].T, 0.0)
    h2 = jnp.maximum(h1 @ p["w2"].T + p["b2"].T, 0.0)
    return h2 @ p["w3"].T + p["b3"].T


if __name__ == "__main__":
    key = jax.random.PRNGKey(0)
    k_params, k1, k2, k3 = jax.random.split(key, 4)
    params = init_params(k_params)

    # 1) Tiny batch: (2, 4, 4) observation flattened to 16 features; pads up to
    #    a single 128-lane tile inside the wrapper (grid=(1,)).
    x_small = jax.random.normal(k1, (2, 4, 4), dtype=jnp.float32)
    out_small = jax.block_until_ready(
        value_net_forward(x_small, params, force_pallas=True))
    assert out_small.shape == (2, 1)
    assert jnp.allclose(out_small, _reference(x_small, params),
                        atol=1e-5, rtol=1e-5)

    # 2) Ragged multi-tile batch, small tile: B=300 with tn=128 -> grid=(3,),
    #    last block only partially valid (exercises clipped edge blocks,
    #    no wrapper-side padding of x).
    x_multi = jax.random.normal(k2, (300, 16), dtype=jnp.float32)
    out_multi = jax.block_until_ready(
        value_net_forward(x_multi, params, tile_n=128, force_pallas=True))
    assert out_multi.shape == (300, 1)
    assert jnp.allclose(out_multi, _reference(x_multi, params),
                        atol=1e-5, rtol=1e-5)

    # 3) Default tile selection: B=1000 -> tn clamped to 512 so the grid has
    #    2 steps (v7x megacore) with a ragged final block.
    x_big = jax.random.normal(k3, (1000, 16), dtype=jnp.float32)
    out_big = jax.block_until_ready(
        value_net_forward(x_big, params, force_pallas=True))
    assert out_big.shape == (1000, 1)
    assert jnp.allclose(out_big, _reference(x_big, params),
                        atol=1e-5, rtol=1e-5)

    print("KERNEL_OK")
</pallas_src>

<mosaic_0001>
module attributes {stable_mosaic.version = 11 : i64} {
  func.func @_mlp_kernel(%arg0: i32, %arg1: memref<128x16xf32, #tpu.memory_space<vmem>>, %arg2: memref<13x17xf32, #tpu.memory_space<vmem>>, %arg3: memref<1x128xf32, #tpu.memory_space<vmem>>) attributes {dimension_semantics = [#tpu.dimension_semantics<parallel>], iteration_bounds = array<i64: 1>, scalar_prefetch = 0 : i64, scratch_operands = 0 : i64, tpu.core_type = #tpu.core_type<tc>, window_params = [{transform_indices = @transform_0, window_bounds = array<i64: 128, 16>}, {pipeline_mode = #tpu.pipeline_mode<synchronous>, transform_indices = @transform_1, window_bounds = array<i64: 13, 17>}, {transform_indices = @transform_2, window_bounds = array<i64: 1, 128>}]} {
    %c0 = arith.constant 0 : index
    %c0_0 = arith.constant 0 : index
    %0 = vector.load %arg1[%c0, %c0_0] : memref<128x16xf32, #tpu.memory_space<vmem>>, vector<128x16xf32>
    %c0_1 = arith.constant 0 : index
    %c0_2 = arith.constant 0 : index
    %1 = vector.load %arg2[%c0_1, %c0_2] : memref<13x17xf32, #tpu.memory_space<vmem>>, vector<8x16xf32>
    %c0_3 = arith.constant 0 : index
    %c16 = arith.constant 16 : index
    %2 = vector.load %arg2[%c0_3, %c16] : memref<13x17xf32, #tpu.memory_space<vmem>>, vector<8x1xf32>
    %c8 = arith.constant 8 : index
    %c0_4 = arith.constant 0 : index
    %3 = vector.load %arg2[%c8, %c0_4] : memref<13x17xf32, #tpu.memory_space<vmem>>, vector<4x8xf32>
    %c8_5 = arith.constant 8 : index
    %c16_6 = arith.constant 16 : index
    %4 = vector.load %arg2[%c8_5, %c16_6] : memref<13x17xf32, #tpu.memory_space<vmem>>, vector<4x1xf32>
    %c12 = arith.constant 12 : index
    %c0_7 = arith.constant 0 : index
    %5 = vector.load %arg2[%c12, %c0_7] : memref<13x17xf32, #tpu.memory_space<vmem>>, vector<1x4xf32>
    %c12_8 = arith.constant 12 : index
    %c16_9 = arith.constant 16 : index
    %6 = vector.load %arg2[%c12_8, %c16_9] : memref<13x17xf32, #tpu.memory_space<vmem>>, vector<1x1xf32>
    %cst = arith.constant dense<0.000000e+00> : vector<8x128xf32>
    %7 = tpu.matmul %1, %0, %cst {dimension_numbers = #tpu.dot_dimension_numbers<[1], [1], [0], [0], [0, 0, 1, 0], [], []>} : vector<8x16xf32>, vector<128x16xf32>, vector<8x128xf32> -> vector<8x128xf32>
    %8 = vector.broadcast %2 : vector<8x1xf32> to vector<8x128xf32>
    %9 = arith.addf %7, %8 : vector<8x128xf32>
    %cst_10 = arith.constant 0.000000e+00 : f32
    %10 = vector.broadcast %cst_10 : f32 to vector<8x128xf32>
    %11 = arith.maximumf %9, %10 : vector<8x128xf32>
    %cst_11 = arith.constant dense<0.000000e+00> : vector<4x128xf32>
    %12 = tpu.matmul %3, %11, %cst_11 {dimension_numbers = #tpu.dot_dimension_numbers<[1], [0], [0], [1], [0, 0, 1, 1], [], []>} : vector<4x8xf32>, vector<8x128xf32>, vector<4x128xf32> -> vector<4x128xf32>
    %13 = vector.broadcast %4 : vector<4x1xf32> to vector<4x128xf32>
    %14 = arith.addf %12, %13 : vector<4x128xf32>
    %cst_12 = arith.constant 0.000000e+00 : f32
    %15 = vector.broadcast %cst_12 : f32 to vector<4x128xf32>
    %16 = arith.maximumf %14, %15 : vector<4x128xf32>
    %cst_13 = arith.constant dense<0.000000e+00> : vector<1x128xf32>
    %17 = tpu.matmul %5, %16, %cst_13 {dimension_numbers = #tpu.dot_dimension_numbers<[1], [0], [0], [1], [0, 0, 1, 1], [], []>} : vector<1x4xf32>, vector<4x128xf32>, vector<1x128xf32> -> vector<1x128xf32>
    %18 = vector.broadcast %6 : vector<1x1xf32> to vector<1x128xf32>
    %19 = arith.addf %17, %18 : vector<1x128xf32>
    %c0_14 = arith.constant 0 : index
    %c0_15 = arith.constant 0 : index
    %20 = vector.load %arg3[%c0_14, %c0_15] : memref<1x128xf32, #tpu.memory_space<vmem>>, vector<1x128xf32>
    tpu.vector_store %arg3[%c0_14, %c0_15], %19 {strides = array<i32>} : memref<1x128xf32, #tpu.memory_space<vmem>>, vector<1x128xf32>,
    return
  }
  func.func @transform_0(%arg0: i32) -> (i32, i32) {
    %c0_i32 = arith.constant 0 : i32
    %c0_i32_0 = arith.constant 0 : i32
    return %arg0, %c0_i32 : i32, i32
  }
  func.func @transform_1(%arg0: i32) -> (i32, i32) {
    %c0_i32 = arith.constant 0 : i32
    %c0_i32_0 = arith.constant 0 : i32
    %c0_i32_1 = arith.constant 0 : i32
    return %c0_i32, %c0_i32_0 : i32, i32
  }
  func.func @transform_2(%arg0: i32) -> (i32, i32) {
    %c0_i32 = arith.constant 0 : i32
    %c0_i32_0 = arith.constant 0 : i32
    return %c0_i32, %arg0 : i32, i32
  }
}

</mosaic_0001>

<bundles_post_ra>
// kernel: tpu_custom_call.1
= control target key start
LH: loop header
LB: loop body
LE: loop exit
PB: predicated region body
PF: predicated region fallthrough
CT: control target
= control target key end

     0   :  { %vm36_vm0 = vcmask 130048   ;;  %s330_s0 = inlined_call_operand.vmem [shape: f32[128,16], index: 0, kind: input, shape index: {}]   ;;  %s331_s1 = inlined_call_operand.vmem [shape: f32[13,17], index: 1, kind: input, shape index: {}]   ;;  %s332_s2 = inlined_call_operand.hbm [shape: f32[1,128], index: 2, kind: output, shape index: {}]  }
   0x1   :  { %v27_v0 = vld [vmem:[%s330_s0 + $0x78] sm:$0xff]  ;;  %v26_v1 = vld [vmem:[%s330_s0 + $0x70] sm:$0xff] }
   0x2   :  { %186 = vmatpush.xpose.msk.msra.mxu0 %vm36_vm0, %v27_v0 }
   0x3   :  { %7 = vsyncpa [#allocation3], 0  ;;  %v25_v2 = vld [vmem:[%s330_s0 + $0x68] sm:$0xff]  ;;  %v24_v3 = vld [vmem:[%s330_s0 + $0x60] sm:$0xff]  ;;  %v236_v10 = vmov 16   ;;  %vm113_vm1 = vcmask 64512  }
   0x4   :  { %v23_v4 = vld [vmem:[%s330_s0 + $0x58] sm:$0xff]  ;;  %v22_v5 = vld [vmem:[%s330_s0 + $0x50] sm:$0xff]  ;;  %v21_v6 = vld [vmem:[%s330_s0 + $0x48] sm:$0xff]  ;;  %208 = vset.pattern.permute.xlu0 %v236_v10  ;;  %209 = vset.pattern.permute.xlu1 %v236_v10  ;;  %vm145_vm2 = vcmask 1043456   ;;  %vm142_vm3 = vcmask 31744   ;;  %s177_s22 = sshll.u32 %s332_s2, 4  ;;  %s178_s22 = int_to_ptr.hbm [resolvable:$true] %s177_s22 }
   0x5   :  { %v20_v7 = vld [vmem:[%s330_s0 + $0x40] sm:$0xff]  ;;  %v19_v8 = vld [vmem:[%s330_s0 + $0x38] sm:$0xff]  ;;  %v18_v11 = vld [vmem:[%s330_s0 + $0x30] sm:$0xff] }
   0x6   :  { %187 = vmatpush.xpose.msk.msra.mxu0 %vm36_vm0, %v26_v1  ;;  %v28_v9 = vld [vmem:[%s331_s1] sm:$0xff]  ;;  %v17_v12 = vld [vmem:[%s330_s0 + $0x28] sm:$0xff]  ;;  %v15_v15 = vld [vmem:[%s330_s0 + $0x18] sm:$0xff] }
   0x7   :  { %33 = vperm.xlu0 %208, %v28_v9   ;;  %v29_v13 = vld [vmem:[%s331_s1 + $0x8] sm:$0xf]  ;;  %v16_v14 = vld [vmem:[%s330_s0 + $0x20] sm:$0xff]  ;;  %v14_v16 = vld [vmem:[%s330_s0 + $0x10] sm:$0xff] }
   0x8   :  { %v13_v17 = vld [vmem:[%s330_s0 + $0x8] sm:$0xff]  ;;  %v12_v18 = vld [vmem:[%s330_s0] sm:$0xff]  ;;  %s237_s0 = smov [#allocation2]  }
   0x9   :  { %v30_v23 = vld [vmem:[%s331_s1 + $0xc] sm:$0x1]  ;;  %s175_s19 = sshll.u32 %s237_s0, 4  ;;  %s176_s19 = int_to_ptr.vmem [resolvable:$true] %s175_s19 }
   0xa   :  { %188 = vmatpush.xpose.msk.msra.mxu0 %vm36_vm0, %v25_v2  ;;  %139 = vperm.xlu1 %209, %v30_v23  }
   0xe   :  { %189 = vmatpush.xpose.msk.msra.mxu0 %vm36_vm0, %v24_v3 }
   0xf   :  { %110 = vperm.xlu0 %208, %v29_v13  }
  0x12   :  { %190 = vmatpush.xpose.msk.msra.mxu0 %vm36_vm0, %v23_v4 }
  0x16   :  { %191 = vmatpush.xpose.msk.msra.mxu0 %vm36_vm0, %v22_v5 }
  0x1a   :  { %192 = vmatpush.xpose.msk.msra.mxu0 %vm36_vm0, %v21_v6 }
  0x1e   :  { %193 = vmatpush.xpose.msk.msra.mxu0 %vm36_vm0, %v20_v7 }
  0x22   :  { %194 = vmatpush.xpose.msk.msra.mxu0 %vm36_vm0, %v19_v8 }
  0x26   :  { %195 = vmatpush.xpose.msk.msra.mxu0 %vm36_vm0, %v18_v11 }
  0x2a   :  { %196 = vmatpush.xpose.msk.msra.mxu0 %vm36_vm0, %v17_v12 }
  0x2e   :  { %197 = vmatpush.xpose.msk.msra.mxu0 %vm36_vm0, %v16_v14 }
  0x32   :  { %198 = vmatpush.xpose.msk.msra.mxu0 %vm36_vm0, %v15_v15 }
  0x36   :  { %199 = vmatpush.xpose.msk.msra.mxu0 %vm36_vm0, %v14_v16 }
  0x3a   :  { %200 = vmatpush.xpose.msk.msra.mxu0 %vm36_vm0, %v13_v17 }
  0x3e   :  { %201 = vmatpush.xpose.msk.msra.mxu0 %vm36_vm0, %v12_v18 }
  0x41   :  { %202 = vmatmul.msk.f32.vlgmr.msra.gmra.mxu0 %vm36_vm0, %v28_v9 }
  0x79   :  { %v34_v19 = vpop.permute.xlu0 %33 }
  0x7c   :  { %v140_v28 = vpop.permute.xlu1 %139 }
  0x81   :  { %v111_v24 = vpop.permute.xlu0 %110 }
  0xbe   :  { %v104_v20 = vpop.f32.mrf.mxu0 }
  0xbf   :  { %v105_v21 = vadd.f32 %v104_v20, %v34_v19 }
  0xc1   :  { %v107_v22 = vmax.f32 %v105_v21, 0.0 }
  0xc3   :  { %131 = vmatpush.msra.mxu1 %v107_v22 }
  0xc4   :  { %203 = vmatmul.msk.f32.vlgmr.msra.gmra.mxu1 %vm113_vm1, %v29_v13 }
 0x141   :  { %v133_v25 = vpop.f32.mrf.mxu1 }
 0x142   :  { %v134_v26 = vadd.f32 %v133_v25, %v111_v24 }
 0x144   :  { %v136_v27 = vmax.f32 %v134_v26, 0.0 }
 0x146   :  { %204 = vmatpush.msk.msra.mxu2 %vm145_vm2, %v136_v27 }
 0x147   :  { %205 = vmatmul.msk.f32.vlgmr.msra.gmra.mxu2 %vm142_vm3, %v30_v23 }
 0x1ca   :  { %v166_v29 = vpop.f32.mrf.mxu2 }
 0x1cb   :  { %v167_v30 = vadd.f32 %v166_v29, %v140_v28 }
 0x1cd   :  { %169 = vst [vmem:[#allocation2] sm:$0x1] %v167_v30 }
 0x1ce   :  { %180 = dma.vmem_to_hbm [thread:$0]  %s176_s19, 16, %s178_s22, [#allocation3]  }
 0x1cf   :  { %234 = dma.done.wait [#allocation3], 16  }
 0x1d0   :  { %235 = vsyncadd [#allocation3], 4294967280 }
 0x1d1   :  { %185 = vsyncpa [#allocation3], 1 }

</bundles_post_ra>
